<compile_context>
chip_gen: v7x
topology: tpu7x:2x2x1
jax: 0.10.0
libtpu: 0.0.40
codegen_flags: <defaults>
</compile_context>

<pallas_src>
import jax
import jax.numpy as jnp
from jax.experimental import pallas as pl
from jax.experimental.pallas import tpu as pltpu


def dnn_kernel(x_ref, w1_ref, b1_ref, w2_ref, b2_ref, w3_ref, b3_ref, o_ref):
    cd = x_ref.dtype  # compute dtype for MXU operands (bf16 or f32)

    # fc1 + ReLU  (MXU matmul, f32 accumulate, f32 bias add)
    h1 = jnp.dot(x_ref[...], w1_ref[...],
                 preferred_element_type=jnp.float32) + b1_ref[...]
    h1 = jnp.maximum(h1, 0.0).astype(cd)

    # fc2 + ReLU
    h2 = jnp.dot(h1, w2_ref[...],
                 preferred_element_type=jnp.float32) + b2_ref[...]
    h2 = jnp.maximum(h2, 0.0).astype(cd)

    # fc_out (padded class lanes carry a -1e30 bias -> exp underflows to 0)
    logits = jnp.dot(h2, w3_ref[...],
                     preferred_element_type=jnp.float32) + b3_ref[...]

    # numerically stable softmax along the lane dim
    m = jnp.max(logits, axis=-1, keepdims=True)
    e = jnp.exp(logits - m)
    denom = jnp.sum(e, axis=-1, keepdims=True)
    probs = e * pl.reciprocal(denom, approx=True)
    o_ref[...] = probs.astype(o_ref.dtype)


def _round_up(x, m):
    return (x + m - 1) // m * m


def dnn_forward(x, params, *, batch_tile=512, lane=128, use_bf16=True):
    """Run the padded, tiled Pallas forward pass and return [B, C] probabilities."""
    w1, b1, w2, b2, w3, b3 = params
    B, D_in = x.shape
    H, H2, C = w1.shape[1], w2.shape[1], w3.shape[1]

    # Pad all feature dims to full 128-lane width (lane-dense matmuls / stores).
    Dp = _round_up(D_in, lane)
    Hp = _round_up(H, lane)
    H2p = _round_up(H2, lane)
    Cp = _round_up(C, lane)

    # Batch tiling: whole batch in one step when small, else batch_tile rows
    # per step; pad batch so the grid divides evenly (no divisibility assert).
    tile = min(batch_tile, _round_up(B, 8))
    Bp = _round_up(B, tile)
    grid = (Bp // tile,)

    in_dtype = jnp.bfloat16 if use_bf16 else jnp.float32

    def pad2(a, rows, cols, fill=0.0):
        return jnp.pad(a, ((0, rows - a.shape[0]), (0, cols - a.shape[1])),
                       constant_values=fill)

    xp = pad2(x, Bp, Dp).astype(in_dtype)
    w1p = pad2(w1, Dp, Hp).astype(in_dtype)
    w2p = pad2(w2, Hp, H2p).astype(in_dtype)
    w3p = pad2(w3, H2p, Cp).astype(in_dtype)
    b1p = pad2(b1, 1, Hp).astype(jnp.float32)
    b2p = pad2(b2, 1, H2p).astype(jnp.float32)
    # Large negative bias on padded class lanes => softmax ignores them.
    b3p = pad2(b3, 1, Cp, fill=-1e30).astype(jnp.float32)

    # Constant index_map -> weights/biases stay resident in VMEM across steps;
    # only the x tile and output tile are DMA'd per grid step.
    const = lambda shape: pl.BlockSpec(shape, lambda i: (0, 0))

    out = pl.pallas_call(
        dnn_kernel,
        out_shape=jax.ShapeDtypeStruct((Bp, Cp), jnp.float32),
        grid_spec=pltpu.PrefetchScalarGridSpec(
            num_scalar_prefetch=0,
            grid=grid,
            in_specs=[
                pl.BlockSpec((tile, Dp), lambda i: (i, 0)),  # x tile (streamed)
                const((Dp, Hp)),    # w1
                const((1, Hp)),     # b1
                const((Hp, H2p)),   # w2
                const((1, H2p)),    # b2
                const((H2p, Cp)),   # w3
                const((1, Cp)),     # b3
            ],
            out_specs=pl.BlockSpec((tile, Cp), lambda i: (i, 0)),
        ),
        compiler_params=pltpu.CompilerParams(
            dimension_semantics=("parallel",),
            vmem_limit_bytes=64 << 20,
        ),
    )(xp, w1p, b1p, w2p, b2p, w3p, b3p)

    # Slice away batch padding and padded class lanes.
    return out[:B, :C]


def init_params(key, input_size, hidden_size, class_number):
    """Deterministic init mimicking PyTorch nn.Linear (uniform +/- 1/sqrt(fan_in))."""
    def linear(key, fan_in, fan_out):
        kw, kb = jax.random.split(key)
        bound = 1.0 / jnp.sqrt(fan_in)
        # stored as [in, out] so the kernel can do x @ W
        w = jax.random.uniform(kw, (fan_in, fan_out), jnp.float32, -bound, bound)
        b = jax.random.uniform(kb, (1, fan_out), jnp.float32, -bound, bound)
        return w, b

    k1, k2, k3 = jax.random.split(key, 3)
    w1, b1 = linear(k1, input_size, hidden_size)
    w2, b2 = linear(k2, hidden_size, hidden_size // 2)
    w3, b3 = linear(k3, hidden_size // 2, class_number)
    return (w1, b1, w2, b2, w3, b3)


def dnn_reference(x, params):
    w1, b1, w2, b2, w3, b3 = params
    h1 = jax.nn.relu(x @ w1 + b1)
    h2 = jax.nn.relu(h1 @ w2 + b2)
    return jax.nn.softmax(h2 @ w3 + b3, axis=-1)


if __name__ == "__main__":
    # Shapes consistent with the module: input_size=32, hidden=32, classes=10.
    input_size, hidden_size, class_number = 32, 32, 10

    key = jax.random.PRNGKey(0)
    k_params, k_x1, k_x2 = jax.random.split(key, 3)
    params = init_params(k_params, input_size, hidden_size, class_number)

    # Tolerances are loose because of bf16 matmul inputs + approx reciprocal.
    ATOL = 2e-2

    # Case 1: small batch -> single grid step (tile covers the whole batch).
    batch = 16
    x = jax.random.normal(k_x1, (batch, input_size), jnp.float32)
    out = jax.block_until_ready(dnn_forward(x, params))
    ref = dnn_reference(x, params)
    assert out.shape == (batch, class_number)
    assert jnp.allclose(out, ref, atol=ATOL), "mismatch vs reference (small batch)"
    assert jnp.allclose(jnp.sum(out, axis=-1), 1.0, atol=1e-2)

    # Case 2: non-multiple batch -> padded batch, multi-step parallel grid.
    batch2 = 300
    x2 = jax.random.normal(k_x2, (batch2, input_size), jnp.float32)
    out2 = jax.block_until_ready(dnn_forward(x2, params, batch_tile=256))
    ref2 = dnn_reference(x2, params)
    assert out2.shape == (batch2, class_number)
    assert jnp.allclose(out2, ref2, atol=ATOL), "mismatch vs reference (large batch)"
    assert jnp.allclose(jnp.sum(out2, axis=-1), 1.0, atol=1e-2)

    print("KERNEL_OK")
</pallas_src>

<mosaic_0001>
module attributes {stable_mosaic.version = 11 : i64} {
  func.func @dnn_kernel(%arg0: i32, %arg1: memref<16x128xbf16, #tpu.memory_space<vmem>>, %arg2: memref<128x128xbf16, #tpu.memory_space<vmem>>, %arg3: memref<1x128xf32, #tpu.memory_space<vmem>>, %arg4: memref<128x128xbf16, #tpu.memory_space<vmem>>, %arg5: memref<1x128xf32, #tpu.memory_space<vmem>>, %arg6: memref<128x128xbf16, #tpu.memory_space<vmem>>, %arg7: memref<1x128xf32, #tpu.memory_space<vmem>>, %arg8: memref<16x128xf32, #tpu.memory_space<vmem>>) attributes {dimension_semantics = [#tpu.dimension_semantics<parallel>], iteration_bounds = array<i64: 1>, scalar_prefetch = 0 : i64, scratch_operands = 0 : i64, tpu.core_type = #tpu.core_type<tc>, window_params = [{transform_indices = @transform_0, window_bounds = array<i64: 16, 128>}, {pipeline_mode = #tpu.pipeline_mode<synchronous>, transform_indices = @transform_1, window_bounds = array<i64: 128, 128>}, {pipeline_mode = #tpu.pipeline_mode<synchronous>, transform_indices = @transform_2, window_bounds = array<i64: 1, 128>}, {pipeline_mode = #tpu.pipeline_mode<synchronous>, transform_indices = @transform_3, window_bounds = array<i64: 128, 128>}, {pipeline_mode = #tpu.pipeline_mode<synchronous>, transform_indices = @transform_4, window_bounds = array<i64: 1, 128>}, {pipeline_mode = #tpu.pipeline_mode<synchronous>, transform_indices = @transform_5, window_bounds = array<i64: 128, 128>}, {pipeline_mode = #tpu.pipeline_mode<synchronous>, transform_indices = @transform_6, window_bounds = array<i64: 1, 128>}, {transform_indices = @transform_7, window_bounds = array<i64: 16, 128>}]} {
    %c0 = arith.constant 0 : index
    %c0_0 = arith.constant 0 : index
    %0 = vector.load %arg1[%c0, %c0_0] : memref<16x128xbf16, #tpu.memory_space<vmem>>, vector<16x128xbf16>
    %c0_1 = arith.constant 0 : index
    %c0_2 = arith.constant 0 : index
    %1 = vector.load %arg2[%c0_1, %c0_2] : memref<128x128xbf16, #tpu.memory_space<vmem>>, vector<128x128xbf16>
    %cst = arith.constant dense<0.000000e+00> : vector<16x128xf32>
    %2 = tpu.matmul %0, %1, %cst {dimension_numbers = #tpu.dot_dimension_numbers<[1], [0], [0], [1], [0, 0, 1, 1], [], []>} : vector<16x128xbf16>, vector<128x128xbf16>, vector<16x128xf32> -> vector<16x128xf32>
    %c0_3 = arith.constant 0 : index
    %c0_4 = arith.constant 0 : index
    %3 = vector.load %arg3[%c0_3, %c0_4] : memref<1x128xf32, #tpu.memory_space<vmem>>, vector<1x128xf32>
    %4 = vector.broadcast %3 : vector<1x128xf32> to vector<16x128xf32>
    %5 = arith.addf %2, %4 : vector<16x128xf32>
    %cst_5 = arith.constant 0.000000e+00 : f32
    %6 = vector.broadcast %cst_5 : f32 to vector<16x128xf32>
    %7 = arith.maximumf %5, %6 : vector<16x128xf32>
    %8 = arith.truncf %7 : vector<16x128xf32> to vector<16x128xbf16>
    %c0_6 = arith.constant 0 : index
    %c0_7 = arith.constant 0 : index
    %9 = vector.load %arg4[%c0_6, %c0_7] : memref<128x128xbf16, #tpu.memory_space<vmem>>, vector<128x128xbf16>
    %cst_8 = arith.constant dense<0.000000e+00> : vector<16x128xf32>
    %10 = tpu.matmul %8, %9, %cst_8 {dimension_numbers = #tpu.dot_dimension_numbers<[1], [0], [0], [1], [0, 0, 1, 1], [], []>} : vector<16x128xbf16>, vector<128x128xbf16>, vector<16x128xf32> -> vector<16x128xf32>
    %c0_9 = arith.constant 0 : index
    %c0_10 = arith.constant 0 : index
    %11 = vector.load %arg5[%c0_9, %c0_10] : memref<1x128xf32, #tpu.memory_space<vmem>>, vector<1x128xf32>
    %12 = vector.broadcast %11 : vector<1x128xf32> to vector<16x128xf32>
    %13 = arith.addf %10, %12 : vector<16x128xf32>
    %cst_11 = arith.constant 0.000000e+00 : f32
    %14 = vector.broadcast %cst_11 : f32 to vector<16x128xf32>
    %15 = arith.maximumf %13, %14 : vector<16x128xf32>
    %16 = arith.truncf %15 : vector<16x128xf32> to vector<16x128xbf16>
    %c0_12 = arith.constant 0 : index
    %c0_13 = arith.constant 0 : index
    %17 = vector.load %arg6[%c0_12, %c0_13] : memref<128x128xbf16, #tpu.memory_space<vmem>>, vector<128x128xbf16>
    %cst_14 = arith.constant dense<0.000000e+00> : vector<16x128xf32>
    %18 = tpu.matmul %16, %17, %cst_14 {dimension_numbers = #tpu.dot_dimension_numbers<[1], [0], [0], [1], [0, 0, 1, 1], [], []>} : vector<16x128xbf16>, vector<128x128xbf16>, vector<16x128xf32> -> vector<16x128xf32>
    %c0_15 = arith.constant 0 : index
    %c0_16 = arith.constant 0 : index
    %19 = vector.load %arg7[%c0_15, %c0_16] : memref<1x128xf32, #tpu.memory_space<vmem>>, vector<1x128xf32>
    %20 = vector.broadcast %19 : vector<1x128xf32> to vector<16x128xf32>
    %21 = arith.addf %18, %20 : vector<16x128xf32>
    %cst_17 = arith.constant dense<0xFF800000> : vector<16xf32>
    %22 = vector.multi_reduction <maximumf>, %21, %cst_17 [1] : vector<16x128xf32> to vector<16xf32>
    %23 = vector.shape_cast %22 : vector<16xf32> to vector<16x1xf32>
    %24 = vector.broadcast %23 : vector<16x1xf32> to vector<16x128xf32>
    %25 = arith.subf %21, %24 : vector<16x128xf32>
    %26 = math.exp %25 : vector<16x128xf32>
    %cst_18 = arith.constant dense<0.000000e+00> : vector<16xf32>
    %27 = vector.multi_reduction <add>, %26, %cst_18 [1] : vector<16x128xf32> to vector<16xf32>
    %28 = vector.shape_cast %27 : vector<16xf32> to vector<16x1xf32>
    %29 = tpu.reciprocal %28 {approx = true} : vector<16x1xf32> -> vector<16x1xf32>
    %30 = vector.broadcast %29 : vector<16x1xf32> to vector<16x128xf32>
    %31 = arith.mulf %26, %30 : vector<16x128xf32>
    %c0_19 = arith.constant 0 : index
    %c0_20 = arith.constant 0 : index
    %32 = vector.load %arg8[%c0_19, %c0_20] : memref<16x128xf32, #tpu.memory_space<vmem>>, vector<16x128xf32>
    tpu.vector_store %arg8[%c0_19, %c0_20], %31 {strides = array<i32>} : memref<16x128xf32, #tpu.memory_space<vmem>>, vector<16x128xf32>,
    return
  }
  func.func @transform_0(%arg0: i32) -> (i32, i32) {
    %c0_i32 = arith.constant 0 : i32
    %c0_i32_0 = arith.constant 0 : i32
    return %arg0, %c0_i32 : i32, i32
  }
  func.func @transform_1(%arg0: i32) -> (i32, i32) {
    %c0_i32 = arith.constant 0 : i32
    %c0_i32_0 = arith.constant 0 : i32
    %c0_i32_1 = arith.constant 0 : i32
    return %c0_i32, %c0_i32_0 : i32, i32
  }
  func.func @transform_2(%arg0: i32) -> (i32, i32) {
    %c0_i32 = arith.constant 0 : i32
    %c0_i32_0 = arith.constant 0 : i32
    %c0_i32_1 = arith.constant 0 : i32
    return %c0_i32, %c0_i32_0 : i32, i32
  }
  func.func @transform_3(%arg0: i32) -> (i32, i32) {
    %c0_i32 = arith.constant 0 : i32
    %c0_i32_0 = arith.constant 0 : i32
    %c0_i32_1 = arith.constant 0 : i32
    return %c0_i32, %c0_i32_0 : i32, i32
  }
  func.func @transform_4(%arg0: i32) -> (i32, i32) {
    %c0_i32 = arith.constant 0 : i32
    %c0_i32_0 = arith.constant 0 : i32
    %c0_i32_1 = arith.constant 0 : i32
    return %c0_i32, %c0_i32_0 : i32, i32
  }
  func.func @transform_5(%arg0: i32) -> (i32, i32) {
    %c0_i32 = arith.constant 0 : i32
    %c0_i32_0 = arith.constant 0 : i32
    %c0_i32_1 = arith.constant 0 : i32
    return %c0_i32, %c0_i32_0 : i32, i32
  }
  func.func @transform_6(%arg0: i32) -> (i32, i32) {
    %c0_i32 = arith.constant 0 : i32
    %c0_i32_0 = arith.constant 0 : i32
    %c0_i32_1 = arith.constant 0 : i32
    return %c0_i32, %c0_i32_0 : i32, i32
  }
  func.func @transform_7(%arg0: i32) -> (i32, i32) {
    %c0_i32 = arith.constant 0 : i32
    %c0_i32_0 = arith.constant 0 : i32
    return %arg0, %c0_i32 : i32, i32
  }
}

</mosaic_0001>

<bundles_post_ra>
// kernel: tpu_custom_call.1
= control target key start
LH: loop header
LB: loop body
LE: loop exit
PB: predicated region body
PF: predicated region fallthrough
CT: control target
= control target key end

     0   :  { %12 = vsyncpa [#allocation3], 0  ;;  %s1061_s0 = inlined_call_operand.hbm [shape: bf16[16,128], index: 0, kind: input, shape index: {}]   ;;  %s1062_s1 = inlined_call_operand.hbm [shape: bf16[128,128], index: 1, kind: input, shape index: {}]   ;;  %s1063_s2 = inlined_call_operand.hbm [shape: f32[1,128], index: 2, kind: input, shape index: {}]   ;;  %s1064_s3 = inlined_call_operand.hbm [shape: bf16[128,128], index: 3, kind: input, shape index: {}]   ;;  %s1065_s4 = inlined_call_operand.hbm [shape: f32[1,128], index: 4, kind: input, shape index: {}]   ;;  %s1066_s5 = inlined_call_operand.hbm [shape: bf16[128,128], index: 5, kind: input, shape index: {}]   ;;  %s1067_s6 = inlined_call_operand.hbm [shape: f32[1,128], index: 6, kind: input, shape index: {}]   ;;  %s1068_s7 = inlined_call_operand.hbm [shape: f32[16,128], index: 7, kind: output, shape index: {}]  }
   0x1   :  { %13 = vsyncpa [#allocation6], 0 }
   0x2   :  { %14 = vsyncpa [#allocation9], 0 }
   0x3   :  { %15 = vsyncpa [#allocation12], 0 }
   0x4   :  { %16 = vsyncpa [#allocation4], 0  ;;  %s855_s24 = smov [#allocation5]   ;;  %s856_s26 = smov [#allocation8]  }
   0x5   :  { %s34_s25 = sshll.u32 %s855_s24, 4  ;;  %s56_s27 = sshll.u32 %s856_s26, 4  ;;  %s35_s25 = int_to_ptr.vmem [resolvable:$true] %s34_s25  ;;  %s909_s27 = int_to_ptr.vmem [resolvable:$true] %s56_s27 }
   0x6   :  { %s669_s30 = scalar_lea.hbm %s1062_s1, 1024 }
   0x7   :  { %p670_p0 = scmp.ne.s32.totalorder %s1062_s1, %s669_s30  ;;  %p673_p1 = scmp.lt.u32.totalorder %s669_s30, %s1062_s1 }
   0x9   :  { %p675_p2 = pnand %p673_p1, %p670_p0 }
   0xb   :  { %678 = shalt.err (!%p675_p2)
}
   0xc   :  { %s679_s12 = scalar_lea.vmem %s35_s25, 1024  ;;  %p684_p4 = scmp.lt.s32.totalorder %s35_s25, %s35_s25 }
   0xd   :  { %p680_p3 = scmp.ne.s32.totalorder %s35_s25, %s679_s12  ;;  %p685_p5 = scmp.lt.s32.totalorder %s679_s12, %s679_s12 }
   0xf   :  { %p686_p6 = por %p685_p5, %p684_p4 }
  0x11   :  { %p687_p7 = pnand %p686_p6, %p680_p3 }
  0x13   :  { %690 = shalt.err (!%p687_p7)
}
  0x14   :  { %s857_s13 = smov 64   ;;  %s858_s14 = smov 4  }
  0x15   :  { %40 = dma.hbm_to_vmem [thread:$0]  %s1062_s1, 1024, %s35_s25, [#allocation6], %s857_s13, %s857_s13, %s858_s14  }
  0x16   :  { %s691_s19 = scalar_lea.hbm %s1064_s3, 1024 }
  0x17   :  { %p692_p8 = scmp.ne.s32.totalorder %s1064_s3, %s691_s19  ;;  %p695_p9 = scmp.lt.u32.totalorder %s691_s19, %s1064_s3 }
  0x19   :  { %p697_p10 = pnand %p695_p9, %p692_p8 }
  0x1b   :  { %700 = shalt.err (!%p697_p10)
}
  0x1c   :  { %s701_s24 = scalar_lea.vmem %s909_s27, 1024  ;;  %p706_p12 = scmp.lt.s32.totalorder %s909_s27, %s909_s27 }
  0x1d   :  { %p702_p11 = scmp.ne.s32.totalorder %s909_s27, %s701_s24  ;;  %p707_p13 = scmp.lt.s32.totalorder %s701_s24, %s701_s24 }
  0x1f   :  { %p708_p0 = por %p707_p13, %p706_p12 }
  0x21   :  { %p709_p1 = pnand %p708_p0, %p702_p11 }
  0x23   :  { %712 = shalt.err (!%p709_p1)
}
  0x24   :  { %62 = dma.hbm_to_vmem [thread:$0]  %s1064_s3, 1024, %s909_s27, [#allocation9], %s857_s13, %s857_s13, %s858_s14  }
  0x25   :  { %s859_s26 = smov [#allocation11]   ;;  %s860_s29 = smov [#allocation2]  }
  0x26   :  { %s78_s28 = sshll.u32 %s859_s26, 4  ;;  %s22_s30 = sshll.u32 %s860_s29, 4  ;;  %s79_s28 = int_to_ptr.vmem [resolvable:$true] %s78_s28  ;;  %s946_s30 = int_to_ptr.vmem [resolvable:$true] %s22_s30 }
  0x27   :  { %s713_s10 = scalar_lea.hbm %s1066_s5, 1024 }
  0x28   :  { %p714_p2 = scmp.ne.s32.totalorder %s1066_s5, %s713_s10  ;;  %p717_p3 = scmp.lt.u32.totalorder %s713_s10, %s1066_s5 }
  0x2a   :  { %p719_p4 = pnand %p717_p3, %p714_p2 }
  0x2c   :  { %722 = shalt.err (!%p719_p4)
}
  0x2d   :  { %s723_s3 = scalar_lea.vmem %s79_s28, 1024  ;;  %p728_p6 = scmp.lt.s32.totalorder %s79_s28, %s79_s28 }
  0x2e   :  { %p724_p5 = scmp.ne.s32.totalorder %s79_s28, %s723_s3  ;;  %p729_p7 = scmp.lt.s32.totalorder %s723_s3, %s723_s3 }
  0x30   :  { %p730_p8 = por %p729_p7, %p728_p6 }
  0x32   :  { %p731_p9 = pnand %p730_p8, %p724_p5 }
  0x34   :  { %734 = shalt.err (!%p731_p9)
}
  0x35   :  { %84 = dma.hbm_to_vmem [thread:$0]  %s1066_s5, 1024, %s79_s28, [#allocation12], %s857_s13, %s857_s13, %s858_s14  }
  0x36   :  { %s735_s20 = scalar_lea.hbm %s1061_s0, 128 }
  0x37   :  { %p736_p10 = scmp.ne.s32.totalorder %s1061_s0, %s735_s20  ;;  %p739_p11 = scmp.lt.u32.totalorder %s735_s20, %s1061_s0 }
  0x39   :  { %p741_p12 = pnand %p739_p11, %p736_p10 }
  0x3b   :  { %744 = shalt.err (!%p741_p12)
}
  0x3c   :  { %s745_s1 = scalar_lea.vmem %s946_s30, 128  ;;  %p750_p0 = scmp.lt.s32.totalorder %s946_s30, %s946_s30 }
  0x3d   :  { %p746_p13 = scmp.ne.s32.totalorder %s946_s30, %s745_s1  ;;  %p751_p1 = scmp.lt.s32.totalorder %s745_s1, %s745_s1 }
  0x3f   :  { %p752_p2 = por %p751_p1, %p750_p0 }
  0x41   :  { %p753_p3 = pnand %p752_p2, %p746_p13 }
  0x43   :  { %756 = shalt.err (!%p753_p3)
}
  0x44   :  { %28 = dma.hbm_to_vmem [thread:$0]  %s1061_s0, 128, %s946_s30, [#allocation3], %s857_s13, %s857_s13, %s858_s14  }
  0x45   :  { %s861_s26 = smov [#allocation7]   ;;  %s862_s29 = smov [#allocation10]  }
  0x46   :  { %s47_s28 = sshll.u32 %s861_s26, 4  ;;  %s69_s8 = sshll.u32 %s862_s29, 4  ;;  %s48_s28 = int_to_ptr.vmem [resolvable:$true] %s47_s28  ;;  %s70_s8 = int_to_ptr.vmem [resolvable:$true] %s69_s8 }
  0x47   :  { %s757_s11 = scalar_lea.hbm %s1063_s2, 16 }
  0x48   :  { %p758_p4 = scmp.ne.s32.totalorder %s1063_s2, %s757_s11  ;;  %p761_p5 = scmp.lt.u32.totalorder %s757_s11, %s1063_s2 }
  0x4a   :  { %p763_p6 = pnand %p761_p5, %p758_p4 }
  0x4c   :  { %766 = shalt.err (!%p763_p6)
}
  0x4d   :  { %s767_s0 = scalar_lea.vmem %s48_s28, 16  ;;  %s771_s13 = scalar_lea.vmem %s48_s28, 32 }
  0x4e   :  { %p768_p7 = scmp.ne.s32.totalorder %s48_s28, %s767_s0  ;;  %p772_p8 = scmp.lt.s32.totalorder %s48_s28, %s48_s28 }
  0x4f   :  { %p773_p9 = scmp.lt.s32.totalorder %s771_s13, %s767_s0 }
  0x51   :  { %p774_p10 = por %p773_p9, %p772_p8 }
  0x53   :  { %p775_p11 = pnand %p774_p10, %p768_p7 }
  0x55   :  { %778 = shalt.err (!%p775_p11)
}
  0x56   :  { %50 = dma.hbm_to_vmem [thread:$0]  %s1063_s2, 16, %s48_s28, [#allocation6]  }
  0x57   :  { %s779_s18 = scalar_lea.hbm %s1065_s4, 16 }
  0x58   :  { %p780_p12 = scmp.ne.s32.totalorder %s1065_s4, %s779_s18  ;;  %p783_p13 = scmp.lt.u32.totalorder %s779_s18, %s1065_s4 }
  0x5a   :  { %p785_p0 = pnand %p783_p13, %p780_p12 }
  0x5c   :  { %788 = shalt.err (!%p785_p0)
}
  0x5d   :  { %s789_s23 = scalar_lea.vmem %s70_s8, 16  ;;  %s793_s24 = scalar_lea.vmem %s70_s8, 32 }
  0x5e   :  { %p790_p1 = scmp.ne.s32.totalorder %s70_s8, %s789_s23  ;;  %p794_p2 = scmp.lt.s32.totalorder %s70_s8, %s70_s8 }
  0x5f   :  { %p795_p3 = scmp.lt.s32.totalorder %s793_s24, %s789_s23 }
  0x61   :  { %p796_p4 = por %p795_p3, %p794_p2 }
  0x63   :  { %p797_p5 = pnand %p796_p4, %p790_p1 }
  0x65   :  { %800 = shalt.err (!%p797_p5)
}
  0x66   :  { %72 = dma.hbm_to_vmem [thread:$0]  %s1065_s4, 16, %s70_s8, [#allocation9]  }
  0x67   :  { %s863_s5 = smov [#allocation13]   ;;  %s801_s29 = scalar_lea.hbm %s1067_s6, 16 }
  0x68   :  { %s91_s25 = sshll.u32 %s863_s5, 4  ;;  %p802_p6 = scmp.ne.s32.totalorder %s1067_s6, %s801_s29  ;;  %s92_s25 = int_to_ptr.vmem [resolvable:$true] %s91_s25 }
  0x69   :  { %p805_p7 = scmp.lt.u32.totalorder %s801_s29, %s1067_s6 }
  0x6b   :  { %p807_p8 = pnand %p805_p7, %p802_p6 }
  0x6d   :  { %810 = shalt.err (!%p807_p8)
}
  0x6e   :  { %s811_s15 = scalar_lea.vmem %s92_s25, 16  ;;  %s815_s4 = scalar_lea.vmem %s92_s25, 32 }
  0x6f   :  { %p812_p9 = scmp.ne.s32.totalorder %s92_s25, %s811_s15  ;;  %p816_p10 = scmp.lt.s32.totalorder %s92_s25, %s92_s25 }
  0x70   :  { %p817_p11 = scmp.lt.s32.totalorder %s815_s4, %s811_s15 }
  0x72   :  { %p818_p12 = por %p817_p11, %p816_p10 }
  0x74   :  { %p819_p13 = pnand %p818_p12, %p812_p9 }
  0x76   :  { %822 = shalt.err (!%p819_p13)
}
  0x77   :  { %94 = dma.hbm_to_vmem [thread:$0]  %s1067_s6, 16, %s92_s25, [#allocation12]  }
  0x78   :  { %845 = dma.done.wait [#allocation3], 128  }
  0x79   :  { %846 = vsyncadd [#allocation3], 4294967168 }
  0x7a   :  { %847 = dma.done.wait [#allocation6], 1040  }
  0x7b   :  { %848 = vsyncadd [#allocation6], 4294966256 }
  0x7c   :  { %849 = dma.done.wait [#allocation9], 1040  }
  0x7d   :  { %850 = vsyncadd [#allocation9], 4294966256 }
  0x7e   :  { %851 = dma.done.wait [#allocation12], 1040  }
  0x7f   :  { %852 = vsyncadd [#allocation12], 4294966256  ;;  %v864_v0 = vmov 0.0   ;;  %vm865_vm0 = vmmov 0   ;;  %v636_v1 = vld [vmem:[#allocation5] sm:$0xff]   ;;  %v637_v2 = vld [vmem:[#allocation5 + $0x8] sm:$0xff]  }
  0x80   :  { %562 = vmatprep.subr.bf16.mxu0 %v864_v0  ;;  %578 = vmatprep.mubr.msk.bf16.mxu0 %vm865_vm0, %v864_v0  ;;  %v638_v3 = vld [vmem:[#allocation5 + $0x10] sm:$0xff]   ;;  %v645_v4 = vld [vmem:[#allocation8] sm:$0xff]   ;;  %v639_v5 = vld [vmem:[#allocation5 + $0x18] sm:$0xff]   ;;  %s866_s6 = smov [#allocation14]  }
  0x81   :  { %582 = vmatprep.subr.bf16.mxu1 %v864_v0  ;;  %598 = vmatprep.mubr.msk.bf16.mxu1 %vm865_vm0, %v864_v0  ;;  %v646_v6 = vld [vmem:[#allocation8 + $0x8] sm:$0xff]   ;;  %v640_v7 = vld [vmem:[#allocation5 + $0x20] sm:$0xff]   ;;  %v647_v8 = vld [vmem:[#allocation8 + $0x10] sm:$0xff]   ;;  %s492_s3 = sshll.u32 %s866_s6, 4  ;;  %s493_s3 = int_to_ptr.vmem [resolvable:$true] %s492_s3 }
  0x82   :  { %563 = vmatpush3.bf16.msra.mxu0 %v636_v1  ;;  %583 = vmatpush3.bf16.msra.mxu1 %v645_v4  ;;  %v641_v9 = vld [vmem:[#allocation5 + $0x28] sm:$0xff]   ;;  %v648_v10 = vld [vmem:[#allocation8 + $0x18] sm:$0xff]   ;;  %v642_v11 = vld [vmem:[#allocation5 + $0x30] sm:$0xff]   ;;  %s823_s0 = scalar_lea.vmem %s493_s3, 256  ;;  %p828_p1 = scmp.lt.s32.totalorder %s493_s3, %s493_s3 }
  0x83   :  { %564 = vmatprep.subr.bf16.mxu0 %v864_v0  ;;  %584 = vmatprep.subr.bf16.mxu1 %v864_v0  ;;  %v649_v12 = vld [vmem:[#allocation8 + $0x20] sm:$0xff]   ;;  %v643_v13 = vld [vmem:[#allocation5 + $0x38] sm:$0xff]   ;;  %v650_v14 = vld [vmem:[#allocation8 + $0x28] sm:$0xff]   ;;  %p824_p0 = scmp.ne.s32.totalorder %s493_s3, %s823_s0  ;;  %p829_p2 = scmp.lt.s32.totalorder %s823_s0, %s823_s0 }
  0x84   :  { %v644_v15 = vld [vmem:[#allocation2] sm:$0xff]   ;;  %v653_v18 = vld [vmem:[#allocation11] sm:$0xff]   ;;  %v654_v19 = vld [vmem:[#allocation11 + $0x8] sm:$0xff]  }
  0x85   :  { %v651_v16 = vld [vmem:[#allocation8 + $0x30] sm:$0xff]   ;;  %v652_v17 = vld [vmem:[#allocation8 + $0x38] sm:$0xff]   ;;  %v657_v22 = vld [vmem:[#allocation11 + $0x20] sm:$0xff]   ;;  %p830_p3 = por %p829_p2, %p828_p1 }
  0x86   :  { %565 = vmatpush3.bf16.msra.mxu0 %v637_v2  ;;  %585 = vmatpush3.bf16.msra.mxu1 %v646_v6  ;;  %v655_v20 = vld [vmem:[#allocation11 + $0x10] sm:$0xff]   ;;  %v656_v21 = vld [vmem:[#allocation11 + $0x18] sm:$0xff]   ;;  %v658_v23 = vld [vmem:[#allocation11 + $0x28] sm:$0xff]  }
  0x87   :  { %566 = vmatprep.subr.bf16.mxu0 %v864_v0  ;;  %586 = vmatprep.subr.bf16.mxu1 %v864_v0  ;;  %v507_v24 = vld [vmem:[#allocation7] ss:$0 sm:$0xff]  ;;  %v659_v34 = vld [vmem:[#allocation11 + $0x30] sm:$0xff]   ;;  %v517_v36 = vld [vmem:[#allocation10] ss:$0 sm:$0xff]  ;;  %p831_p4 = pnand %p830_p3, %p824_p0 }
  0x88   :  { %v660_v35 = vld [vmem:[#allocation11 + $0x38] sm:$0xff]   ;;  %v526_v46 = vld [vmem:[#allocation13] ss:$0 sm:$0xff] }
  0x8a   :  { %567 = vmatpush3.bf16.msra.mxu0 %v638_v3  ;;  %587 = vmatpush3.bf16.msra.mxu1 %v647_v8 }
  0x8b   :  { %568 = vmatprep.subr.bf16.mxu0 %v864_v0  ;;  %588 = vmatprep.subr.bf16.mxu1 %v864_v0 }
  0x8e   :  { %569 = vmatpush3.bf16.msra.mxu0 %v639_v5  ;;  %589 = vmatpush3.bf16.msra.mxu1 %v648_v10 }
  0x8f   :  { %570 = vmatprep.subr.bf16.mxu0 %v864_v0  ;;  %590 = vmatprep.subr.bf16.mxu1 %v864_v0 }
  0x92   :  { %571 = vmatpush3.bf16.msra.mxu0 %v640_v7  ;;  %591 = vmatpush3.bf16.msra.mxu1 %v649_v12 }
  0x93   :  { %572 = vmatprep.subr.bf16.mxu0 %v864_v0  ;;  %592 = vmatprep.subr.bf16.mxu1 %v864_v0 }
  0x96   :  { %573 = vmatpush3.bf16.msra.mxu0 %v641_v9  ;;  %593 = vmatpush3.bf16.msra.mxu1 %v650_v14 }
  0x97   :  { %574 = vmatprep.subr.bf16.mxu0 %v864_v0  ;;  %594 = vmatprep.subr.bf16.mxu1 %v864_v0 }
  0x9a   :  { %575 = vmatpush3.bf16.msra.mxu0 %v642_v11  ;;  %595 = vmatpush3.bf16.msra.mxu1 %v651_v16 }
  0x9b   :  { %576 = vmatprep.subr.bf16.mxu0 %v864_v0  ;;  %596 = vmatprep.subr.bf16.mxu1 %v864_v0 }
  0x9e   :  { %577 = vmatpush3.bf16.msra.mxu0 %v643_v13  ;;  %597 = vmatpush3.bf16.msra.mxu1 %v652_v17 }
  0x9f   :  { %602 = vmatprep.subr.bf16.mxu0 %v864_v0 }
  0xa1   :  { %579 = vmatmul.mubr.bf16.vlgmr.msra.gmra.mrb[0].mxu0 %v644_v15 }
  0xa2   :  { %618 = vmatprep.mubr.msk.bf16.mxu0 %vm865_vm0, %v864_v0  ;;  %603 = vmatpush3.bf16.msra.mxu0 %v653_v18 }
  0xa3   :  { %604 = vmatprep.subr.bf16.mxu0 %v864_v0 }
  0xa6   :  { %605 = vmatpush3.bf16.msra.mxu0 %v654_v19 }
  0xa7   :  { %606 = vmatprep.subr.bf16.mxu0 %v864_v0 }
  0xaa   :  { %607 = vmatpush3.bf16.msra.mxu0 %v655_v20 }
  0xab   :  { %608 = vmatprep.subr.bf16.mxu0 %v864_v0 }
  0xae   :  { %609 = vmatpush3.bf16.msra.mxu0 %v656_v21 }
  0xaf   :  { %610 = vmatprep.subr.bf16.mxu0 %v864_v0 }
  0xb2   :  { %611 = vmatpush3.bf16.msra.mxu0 %v657_v22 }
  0xb3   :  { %612 = vmatprep.subr.bf16.mxu0 %v864_v0 }
  0xb6   :  { %613 = vmatpush3.bf16.msra.mxu0 %v658_v23 }
  0xb7   :  { %614 = vmatprep.subr.bf16.mxu0 %v864_v0 }
  0xba   :  { %615 = vmatpush3.bf16.msra.mxu0 %v659_v34 }
  0xbb   :  { %616 = vmatprep.subr.bf16.mxu0 %v864_v0 }
  0xbe   :  { %617 = vmatpush3.bf16.msra.mxu0 %v660_v35 }
 0x174   :  { %v230_v25 = vpop.f32.mrb[0].mxu0 }
 0x175   :  { %v231_v26 = vadd.f32 %v507_v24, %v230_v25  ;;  %v580_v27 = vpop.f32.mrb[1].mxu0 }
 0x176   :  { %v233_v28 = vpop.f32.mrb[2].mxu0 }
 0x177   :  { %v234_v29 = vadd.f32 %v507_v24, %v233_v28  ;;  %v581_v30 = vpop.f32.mrb[3].mxu0  ;;  %v237_v31 = vmax.f32 %v231_v26, 0.0 }
 0x179   :  { %v238_v32 = vmax.f32 %v234_v29, 0.0 }
 0x17b   :  { %v239_v33 = vpack.c.bf16 %v238_v32, %v237_v31 }
 0x17d   :  { %599 = vmatmul.mubr.bf16.vlgmr.msra.gmra.mrb[0].mxu1 %v239_v33 }
 0x250   :  { %v345_v37 = vpop.f32.mrb[0].mxu1 }
 0x251   :  { %v346_v38 = vadd.f32 %v517_v36, %v345_v37  ;;  %v600_v39 = vpop.f32.mrb[1].mxu1 }
 0x252   :  { %v348_v40 = vpop.f32.mrb[2].mxu1 }
 0x253   :  { %v349_v41 = vadd.f32 %v517_v36, %v348_v40  ;;  %v601_v42 = vpop.f32.mrb[3].mxu1  ;;  %v352_v43 = vmax.f32 %v346_v38, 0.0 }
 0x255   :  { %v353_v44 = vmax.f32 %v349_v41, 0.0 }
 0x257   :  { %v354_v45 = vpack.c.bf16 %v353_v44, %v352_v43 }
 0x259   :  { %619 = vmatmul.mubr.bf16.vlgmr.msra.gmra.mrb[4].mxu0 %v354_v45 }
 0x32c   :  { %v460_v47 = vpop.f32.mrb[4].mxu0 }
 0x32d   :  { %v461_v48 = vadd.f32 %v526_v46, %v460_v47  ;;  %v620_v49 = vpop.f32.mrb[5].mxu0 }
 0x32e   :  { %v463_v50 = vpop.f32.mrb[6].mxu0 }
 0x32f   :  { %467 = vmax.xlane.f32.xlu0 %v461_v48  ;;  %v621_v51 = vpop.f32.mrb[7].mxu0  ;;  %v464_v52 = vadd.f32 %v526_v46, %v463_v50 }
 0x333   :  { %469 = vmax.xlane.f32.xlu0 %v464_v52 }
 0x3bc   :  { %v468_v53 = vpop.xlane.xlu0 %467 }
 0x3bd   :  { %v471_v54 = vsub.f32 %v461_v48, %v468_v53 }
 0x3bf   :  { %v473_v55 = vmul.f32 1.442695, %v471_v54 }
 0x3c0   :  { %v470_v56 = vpop.xlane.xlu0 %469 }
 0x3c1   :  { %661 = vpow2.f32 %v473_v55  ;;  %v472_v57 = vsub.f32 %v464_v52, %v470_v56 }
 0x3c3   :  { %v475_v58 = vmul.f32 1.442695, %v472_v57 }
 0x3c5   :  { %663 = vpow2.f32 %v475_v58 }
 0x3cb   :  { %v662_v59 = vpop.eup %661 }
 0x3cc   :  { %477 = vadd.xlane.f32.xlu1 %v662_v59 }
 0x3cf   :  { %v664_v60 = vpop.eup %663 }
 0x3d0   :  { %479 = vadd.xlane.f32.xlu1 %v664_v60 }
 0x459   :  { %v478_v61 = vpop.xlane.xlu1 %477 }
 0x45a   :  { %665 = vrcp.f32 %v478_v61 }
 0x45d   :  { %v480_v62 = vpop.xlane.xlu1 %479 }
 0x45e   :  { %667 = vrcp.f32 %v480_v62 }
 0x464   :  { %v666_v63 = vpop.eup %665 }
 0x465   :  { %v483_v0 = vmul.f32 %v666_v63, %v662_v59 }
 0x467   :  { %485 = vst [vmem:[#allocation14] sm:$0xff] %v483_v0 }
 0x468   :  { %v668_v1 = vpop.eup %667 }
 0x469   :  { %v484_v2 = vmul.f32 %v668_v1, %v664_v60 }
 0x46b   :  { %486 = vst [vmem:[#allocation14 + $0x8] sm:$0xff] %v484_v2 }
 0x46c   :  { %834 = shalt.err (!%p831_p4)
}
 0x46d   :  { %s835_s30 = scalar_lea.hbm %s1068_s7, 256 }
 0x46e   :  { %p836_p5 = scmp.ne.s32.totalorder %s1068_s7, %s835_s30  ;;  %p839_p6 = scmp.lt.u32.totalorder %s835_s30, %s1068_s7 }
 0x470   :  { %p841_p7 = pnand %p839_p6, %p836_p5 }
 0x472   :  { %844 = shalt.err (!%p841_p7)
}
 0x473   :  { %s867_s20 = smov 128   ;;  %s868_s21 = smov 8  }
 0x474   :  { %498 = dma.vmem_to_hbm [thread:$0]  %s493_s3, 256, %s1068_s7, [#allocation4], %s867_s20, %s867_s20, %s868_s21  }
 0x475   :  { %853 = dma.done.wait [#allocation4], 256  }
 0x476   :  { %854 = vsyncadd [#allocation4], 4294967040 }
 0x477   :  { %502 = vsyncpa [#allocation3], 1 }
 0x478   :  { %503 = vsyncpa [#allocation6], 1 }
 0x479   :  { %504 = vsyncpa [#allocation9], 1 }
 0x47a   :  { %505 = vsyncpa [#allocation12], 1 }
 0x47b   :  { %506 = vsyncpa [#allocation4], 1 }

</bundles_post_ra>
